<compile_context>
chip_gen: v6e
topology: v6e:2x2x1
jax: 0.10.0
libtpu: 0.0.40
codegen_flags: <defaults>
</compile_context>

<pallas_src>
import jax
import jax.numpy as jnp
from jax.experimental import pallas as pl
from jax.experimental.pallas import tpu as pltpu

LANE = 128


def _gin_fused_kernel(eps_ref, a_ref, x_ref, h_ref, w_ref, b_ref, o_ref, hbuf):
    """All L GIN layers for one sample, H resident in VMEM.

    eps_ref: SMEM (L,)        f32   per-layer learnable epsilon
    a_ref:   VMEM (N, N)      f32   adjacency (shared across samples)
    x_ref:   VMEM (N, F)      f32   raw node features (shared across samples)
    h_ref:   VMEM (N, Hh)     f32   per-sample auxiliary features h[s]
    w_ref:   VMEM (L, P, P)   f32   zero-padded, stacked linear weights
    b_ref:   VMEM (L, 1, P)   f32   zero-padded, stacked linear biases
    o_ref:   VMEM (N, P)      f32   lane-dense output (padding lanes are zero)
    hbuf:    VMEM (N, P)      f32   scratch holding the running H
    """
    N = a_ref.shape[0]
    F = x_ref.shape[1]
    Hh = h_ref.shape[1]
    L = w_ref.shape[0]

    # ---- in-kernel concat: H_0 = [X | h | 0-padding] -----------------------
    hbuf[...] = jnp.zeros_like(hbuf)          # padding lanes must be 0 (not garbage)
    hbuf[:, 0:F] = x_ref[...]
    hbuf[:, F:F + Hh] = h_ref[...]

    # identity matrix used to fold the (1 + eps) self-term into the A matmul
    row = jax.lax.broadcasted_iota(jnp.int32, (N, N), 0)
    col = jax.lax.broadcasted_iota(jnp.int32, (N, N), 1)
    eye = (row == col).astype(jnp.float32)
    a = a_ref[...]

    # ---- L fused GIN layers -------------------------------------------------
    for l in range(L):
        a_eff = a + (1.0 + eps_ref[l]) * eye                                  # A + (1+eps_l) I
        comb = jnp.dot(a_eff, hbuf[...], preferred_element_type=jnp.float32)  # MXU
        y = jnp.dot(comb, w_ref[l], preferred_element_type=jnp.float32)       # MXU
        y = y + b_ref[l]
        # per-layer activation = identity (module default `lambda x: x`)
        hbuf[...] = y

    o_ref[...] = hbuf[...].astype(o_ref.dtype)   # full-width lane-dense store


def gin_without_noise_forward(A, X, h, params, sample_size, activation=lambda x: x):
    """Mirror of GINWithoutNoise.forward.

    A: (N, N)            adjacency of `input_graph`
    X: (1, N, F)         feature matrix (torch code requires len(X.shape) == 3)
    h: (sample_size, N, Hh)
    params: list of (W, b, eps) per layer, W stored as (Din, Dout), b (1, Dout), eps (1,)
    """
    if X.ndim != 3:
        raise Exception("dimension of input feature matrix is not 2")
    S = sample_size
    _, N, F = X.shape
    Hh = h.shape[2]
    L = len(params)
    d_last = params[-1][0].shape[1]

    # Pad every feature dimension to a common lane-dense width P (multiple of 128).
    dmax = max([F + Hh] + [W.shape[1] for (W, _, _) in params])
    P = max(LANE, ((dmax + LANE - 1) // LANE) * LANE)

    W_stack = jnp.zeros((L, P, P), jnp.float32)
    b_stack = jnp.zeros((L, 1, P), jnp.float32)
    eps_stack = jnp.zeros((L,), jnp.float32)
    for l, (W, b, eps) in enumerate(params):
        din, dout = W.shape
        W_stack = W_stack.at[l, :din, :dout].set(W.astype(jnp.float32))
        b_stack = b_stack.at[l, 0, :dout].set(b.reshape(-1).astype(jnp.float32))
        eps_stack = eps_stack.at[l].set(eps.reshape(-1)[0].astype(jnp.float32))

    out_padded = pl.pallas_call(
        _gin_fused_kernel,
        out_shape=jax.ShapeDtypeStruct((S, N, P), jnp.float32),
        grid_spec=pltpu.PrefetchScalarGridSpec(
            num_scalar_prefetch=0,
            grid=(S,),
            in_specs=[
                pl.BlockSpec(memory_space=pltpu.MemorySpace.SMEM),    # eps (L,)
                pl.BlockSpec((N, N), lambda s: (0, 0)),               # A (shared)
                pl.BlockSpec((N, F), lambda s: (0, 0)),               # X (shared)
                pl.BlockSpec((None, N, Hh), lambda s: (s, 0, 0)),     # h[s]
                pl.BlockSpec((L, P, P), lambda s: (0, 0, 0)),         # W stack (shared)
                pl.BlockSpec((L, 1, P), lambda s: (0, 0, 0)),         # b stack (shared)
            ],
            out_specs=pl.BlockSpec((None, N, P), lambda s: (s, 0, 0)),
            scratch_shapes=[pltpu.VMEM((N, P), jnp.float32)],
        ),
        compiler_params=pltpu.CompilerParams(
            dimension_semantics=("parallel",)),   # samples shard across TCs on v7x
    )(eps_stack, A, X[0], h, W_stack, b_stack)

    out = out_padded[:, :, :d_last]               # strip lane padding
    return activation(out)                        # final self.activation(outputTensor)


def _reference(A, X, h, params, sample_size, activation=lambda x: x):
    """Pure-JAX reference for correctness check."""
    S = sample_size
    _, N, F = X.shape
    feat = jnp.broadcast_to(X, (S, N, F))
    temp = jnp.concatenate([feat, h], axis=2)
    for (W, b, eps) in params:
        agg = jnp.einsum("nm,smd->snd", A, temp)
        temp = activation(((1.0 + eps[0]) * temp + agg) @ W + b)
    return activation(temp)


def init_params(key, input_dim, output_dims):
    """Deterministic nn.Linear-style init per GIN layer; eps init to 0 (learn_eps=True)."""
    params = []
    dims = [input_dim] + list(output_dims)
    for i in range(len(output_dims)):
        din, dout = dims[i], dims[i + 1]
        key, kw, kb = jax.random.split(key, 3)
        bound = 1.0 / jnp.sqrt(jnp.float32(din))
        W = jax.random.uniform(kw, (din, dout), jnp.float32, -bound, bound)
        b = jax.random.uniform(kb, (1, dout), jnp.float32, -bound, bound)
        eps = jnp.zeros((1,), jnp.float32)
        params.append((W, b, eps))
    return params


if __name__ == "__main__":
    key = jax.random.PRNGKey(0)

    # Small shapes consistent with the module.
    sample_size = 2
    N = 16            # number of graph nodes
    F = 8             # raw node feature dim
    Hh = 8            # dim of the auxiliary tensor h
    input_dim = F + Hh
    output_dims = [32, 16]

    k_a, k_x, k_h, k_p = jax.random.split(key, 4)

    # Symmetric binary adjacency without self loops (stands in for `input_graph`).
    A_rand = jax.random.uniform(k_a, (N, N))
    A = (A_rand < 0.3).astype(jnp.float32)
    A = jnp.maximum(A, A.T) * (1.0 - jnp.eye(N, dtype=jnp.float32))

    X = jax.random.normal(k_x, (1, N, F), jnp.float32)          # 3-D as required
    h = jax.random.normal(k_h, (sample_size, N, Hh), jnp.float32)

    params = init_params(k_p, input_dim, output_dims)

    out = gin_without_noise_forward(A, X, h, params, sample_size)
    out = jax.block_until_ready(out)

    ref = _reference(A, X, h, params, sample_size)
    assert out.shape == (sample_size, N, output_dims[-1])
    assert jnp.allclose(out, ref, atol=1e-4, rtol=1e-4), "mismatch vs reference"

    print("KERNEL_OK")
</pallas_src>

<mosaic_0001>
module attributes {stable_mosaic.version = 11 : i64} {
  func.func @_gin_fused_kernel(%arg0: i32, %arg1: memref<2xf32, #tpu.memory_space<smem>>, %arg2: memref<16x16xf32, #tpu.memory_space<vmem>>, %arg3: memref<16x8xf32, #tpu.memory_space<vmem>>, %arg4: memref<1x16x8xf32, #tpu.memory_space<vmem>>, %arg5: memref<2x128x128xf32, #tpu.memory_space<vmem>>, %arg6: memref<2x1x128xf32, #tpu.memory_space<vmem>>, %arg7: memref<1x16x128xf32, #tpu.memory_space<vmem>>, %arg8: memref<16x128xf32, #tpu.memory_space<vmem>>) attributes {dimension_semantics = [#tpu.dimension_semantics<parallel>], iteration_bounds = array<i64: 2>, scalar_prefetch = 0 : i64, scratch_operands = 1 : i64, tpu.core_type = #tpu.core_type<tc>, window_params = [{transform_indices = @transform_0, window_bounds = array<i64: 2>}, {pipeline_mode = #tpu.pipeline_mode<synchronous>, transform_indices = @transform_1, window_bounds = array<i64: 16, 16>}, {pipeline_mode = #tpu.pipeline_mode<synchronous>, transform_indices = @transform_2, window_bounds = array<i64: 16, 8>}, {transform_indices = @transform_3, window_bounds = array<i64: 1, 16, 8>}, {pipeline_mode = #tpu.pipeline_mode<synchronous>, transform_indices = @transform_4, window_bounds = array<i64: 2, 128, 128>}, {pipeline_mode = #tpu.pipeline_mode<synchronous>, transform_indices = @transform_5, window_bounds = array<i64: 2, 1, 128>}, {transform_indices = @transform_6, window_bounds = array<i64: 1, 16, 128>}]} {
    %cst = arith.constant 0.000000e+00 : f32
    %0 = vector.broadcast %cst : f32 to vector<16x128xf32>
    %c0 = arith.constant 0 : index
    %c0_0 = arith.constant 0 : index
    %1 = vector.load %arg8[%c0, %c0_0] : memref<16x128xf32, #tpu.memory_space<vmem>>, vector<16x128xf32>
    tpu.vector_store %arg8[%c0, %c0_0], %0 {strides = array<i32>} : memref<16x128xf32, #tpu.memory_space<vmem>>, vector<16x128xf32>,
    %c0_1 = arith.constant 0 : index
    %c0_2 = arith.constant 0 : index
    %2 = vector.load %arg3[%c0_1, %c0_2] : memref<16x8xf32, #tpu.memory_space<vmem>>, vector<16x8xf32>
    %c0_3 = arith.constant 0 : index
    %c0_4 = arith.constant 0 : index
    %3 = vector.load %arg8[%c0_3, %c0_4] : memref<16x128xf32, #tpu.memory_space<vmem>>, vector<16x8xf32>
    tpu.vector_store %arg8[%c0_3, %c0_4], %2 {strides = array<i32>} : memref<16x128xf32, #tpu.memory_space<vmem>>, vector<16x8xf32>,
    %c0_5 = arith.constant 0 : index
    %c0_6 = arith.constant 0 : index
    %c0_7 = arith.constant 0 : index
    %4 = vector.load %arg4[%c0_5, %c0_6, %c0_7] : memref<1x16x8xf32, #tpu.memory_space<vmem>>, vector<1x16x8xf32>
    %5 = vector.shape_cast %4 : vector<1x16x8xf32> to vector<16x8xf32>
    %c0_8 = arith.constant 0 : index
    %c8 = arith.constant 8 : index
    %6 = vector.load %arg8[%c0_8, %c8] : memref<16x128xf32, #tpu.memory_space<vmem>>, vector<16x8xf32>
    tpu.vector_store %arg8[%c0_8, %c8], %5 {strides = array<i32>} : memref<16x128xf32, #tpu.memory_space<vmem>>, vector<16x8xf32>,
    %7 = tpu.iota {dimensions = array<i32: 0>} : vector<16x16xi32>
    %8 = tpu.iota {dimensions = array<i32: 1>} : vector<16x16xi32>
    %9 = arith.cmpi eq, %7, %8 : vector<16x16xi32>
    %10 = arith.extui %9 : vector<16x16xi1> to vector<16x16xi32>
    %11 = arith.sitofp %10 : vector<16x16xi32> to vector<16x16xf32>
    %c0_9 = arith.constant 0 : index
    %c0_10 = arith.constant 0 : index
    %12 = vector.load %arg2[%c0_9, %c0_10] : memref<16x16xf32, #tpu.memory_space<vmem>>, vector<16x16xf32>
    %c0_11 = arith.constant 0 : index
    %13 = memref.load %arg1[%c0_11] : memref<2xf32, #tpu.memory_space<smem>>
    %cst_12 = arith.constant 1.000000e+00 : f32
    %14 = arith.addf %cst_12, %13 : f32
    %15 = vector.broadcast %14 : f32 to vector<16x16xf32>
    %16 = arith.mulf %15, %11 : vector<16x16xf32>
    %17 = arith.addf %12, %16 : vector<16x16xf32>
    %c0_13 = arith.constant 0 : index
    %c0_14 = arith.constant 0 : index
    %18 = vector.load %arg8[%c0_13, %c0_14] : memref<16x128xf32, #tpu.memory_space<vmem>>, vector<16x128xf32>
    %cst_15 = arith.constant dense<0.000000e+00> : vector<16x128xf32>
    %19 = tpu.matmul %17, %18, %cst_15 {dimension_numbers = #tpu.dot_dimension_numbers<[1], [0], [0], [1], [0, 0, 1, 1], [], []>} : vector<16x16xf32>, vector<16x128xf32>, vector<16x128xf32> -> vector<16x128xf32>
    %c0_16 = arith.constant 0 : index
    %c0_17 = arith.constant 0 : index
    %c0_18 = arith.constant 0 : index
    %20 = vector.load %arg5[%c0_16, %c0_17, %c0_18] : memref<2x128x128xf32, #tpu.memory_space<vmem>>, vector<1x128x128xf32>
    %21 = vector.shape_cast %20 : vector<1x128x128xf32> to vector<128x128xf32>
    %cst_19 = arith.constant dense<0.000000e+00> : vector<16x128xf32>
    %22 = tpu.matmul %19, %21, %cst_19 {dimension_numbers = #tpu.dot_dimension_numbers<[1], [0], [0], [1], [0, 0, 1, 1], [], []>} : vector<16x128xf32>, vector<128x128xf32>, vector<16x128xf32> -> vector<16x128xf32>
    %c0_20 = arith.constant 0 : index
    %c0_21 = arith.constant 0 : index
    %c0_22 = arith.constant 0 : index
    %23 = vector.load %arg6[%c0_20, %c0_21, %c0_22] : memref<2x1x128xf32, #tpu.memory_space<vmem>>, vector<1x1x128xf32>
    %24 = vector.shape_cast %23 : vector<1x1x128xf32> to vector<1x128xf32>
    %25 = vector.broadcast %24 : vector<1x128xf32> to vector<16x128xf32>
    %26 = arith.addf %22, %25 : vector<16x128xf32>
    %c0_23 = arith.constant 0 : index
    %c0_24 = arith.constant 0 : index
    %27 = vector.load %arg8[%c0_23, %c0_24] : memref<16x128xf32, #tpu.memory_space<vmem>>, vector<16x128xf32>
    tpu.vector_store %arg8[%c0_23, %c0_24], %26 {strides = array<i32>} : memref<16x128xf32, #tpu.memory_space<vmem>>, vector<16x128xf32>,
    %c1 = arith.constant 1 : index
    %28 = memref.load %arg1[%c1] : memref<2xf32, #tpu.memory_space<smem>>
    %cst_25 = arith.constant 1.000000e+00 : f32
    %29 = arith.addf %cst_25, %28 : f32
    %30 = vector.broadcast %29 : f32 to vector<16x16xf32>
    %31 = arith.mulf %30, %11 : vector<16x16xf32>
    %32 = arith.addf %12, %31 : vector<16x16xf32>
    %c0_26 = arith.constant 0 : index
    %c0_27 = arith.constant 0 : index
    %33 = vector.load %arg8[%c0_26, %c0_27] : memref<16x128xf32, #tpu.memory_space<vmem>>, vector<16x128xf32>
    %cst_28 = arith.constant dense<0.000000e+00> : vector<16x128xf32>
    %34 = tpu.matmul %32, %33, %cst_28 {dimension_numbers = #tpu.dot_dimension_numbers<[1], [0], [0], [1], [0, 0, 1, 1], [], []>} : vector<16x16xf32>, vector<16x128xf32>, vector<16x128xf32> -> vector<16x128xf32>
    %c1_29 = arith.constant 1 : index
    %c0_30 = arith.constant 0 : index
    %c0_31 = arith.constant 0 : index
    %35 = vector.load %arg5[%c1_29, %c0_30, %c0_31] : memref<2x128x128xf32, #tpu.memory_space<vmem>>, vector<1x128x128xf32>
    %36 = vector.shape_cast %35 : vector<1x128x128xf32> to vector<128x128xf32>
    %cst_32 = arith.constant dense<0.000000e+00> : vector<16x128xf32>
    %37 = tpu.matmul %34, %36, %cst_32 {dimension_numbers = #tpu.dot_dimension_numbers<[1], [0], [0], [1], [0, 0, 1, 1], [], []>} : vector<16x128xf32>, vector<128x128xf32>, vector<16x128xf32> -> vector<16x128xf32>
    %c1_33 = arith.constant 1 : index
    %c0_34 = arith.constant 0 : index
    %c0_35 = arith.constant 0 : index
    %38 = vector.load %arg6[%c1_33, %c0_34, %c0_35] : memref<2x1x128xf32, #tpu.memory_space<vmem>>, vector<1x1x128xf32>
    %39 = vector.shape_cast %38 : vector<1x1x128xf32> to vector<1x128xf32>
    %40 = vector.broadcast %39 : vector<1x128xf32> to vector<16x128xf32>
    %41 = arith.addf %37, %40 : vector<16x128xf32>
    %c0_36 = arith.constant 0 : index
    %c0_37 = arith.constant 0 : index
    %42 = vector.load %arg8[%c0_36, %c0_37] : memref<16x128xf32, #tpu.memory_space<vmem>>, vector<16x128xf32>
    tpu.vector_store %arg8[%c0_36, %c0_37], %41 {strides = array<i32>} : memref<16x128xf32, #tpu.memory_space<vmem>>, vector<16x128xf32>,
    %c0_38 = arith.constant 0 : index
    %c0_39 = arith.constant 0 : index
    %43 = vector.load %arg8[%c0_38, %c0_39] : memref<16x128xf32, #tpu.memory_space<vmem>>, vector<16x128xf32>
    %c0_40 = arith.constant 0 : index
    %c0_41 = arith.constant 0 : index
    %c0_42 = arith.constant 0 : index
    %44 = vector.load %arg7[%c0_40, %c0_41, %c0_42] : memref<1x16x128xf32, #tpu.memory_space<vmem>>, vector<1x16x128xf32>
    %45 = vector.shape_cast %44 : vector<1x16x128xf32> to vector<16x128xf32>
    %46 = vector.shape_cast %43 : vector<16x128xf32> to vector<1x16x128xf32>
    tpu.vector_store %arg7[%c0_40, %c0_41, %c0_42], %46 {strides = array<i32>} : memref<1x16x128xf32, #tpu.memory_space<vmem>>, vector<1x16x128xf32>,
    return
  }
  func.func @transform_0(%arg0: i32) -> i32 {
    %c0_i32 = arith.constant 0 : i32
    %c0_i32_0 = arith.constant 0 : i32
    return %c0_i32 : i32
  }
  func.func @transform_1(%arg0: i32) -> (i32, i32) {
    %c0_i32 = arith.constant 0 : i32
    %c0_i32_0 = arith.constant 0 : i32
    %c0_i32_1 = arith.constant 0 : i32
    return %c0_i32, %c0_i32_0 : i32, i32
  }
  func.func @transform_2(%arg0: i32) -> (i32, i32) {
    %c0_i32 = arith.constant 0 : i32
    %c0_i32_0 = arith.constant 0 : i32
    %c0_i32_1 = arith.constant 0 : i32
    return %c0_i32, %c0_i32_0 : i32, i32
  }
  func.func @transform_3(%arg0: i32) -> (i32, i32, i32) {
    %c0_i32 = arith.constant 0 : i32
    %c0_i32_0 = arith.constant 0 : i32
    %c0_i32_1 = arith.constant 0 : i32
    return %arg0, %c0_i32, %c0_i32_0 : i32, i32, i32
  }
  func.func @transform_4(%arg0: i32) -> (i32, i32, i32) {
    %c0_i32 = arith.constant 0 : i32
    %c0_i32_0 = arith.constant 0 : i32
    %c0_i32_1 = arith.constant 0 : i32
    %c0_i32_2 = arith.constant 0 : i32
    return %c0_i32, %c0_i32_0, %c0_i32_1 : i32, i32, i32
  }
  func.func @transform_5(%arg0: i32) -> (i32, i32, i32) {
    %c0_i32 = arith.constant 0 : i32
    %c0_i32_0 = arith.constant 0 : i32
    %c0_i32_1 = arith.constant 0 : i32
    %c0_i32_2 = arith.constant 0 : i32
    return %c0_i32, %c0_i32_0, %c0_i32_1 : i32, i32, i32
  }
  func.func @transform_6(%arg0: i32) -> (i32, i32, i32) {
    %c0_i32 = arith.constant 0 : i32
    %c0_i32_0 = arith.constant 0 : i32
    %c0_i32_1 = arith.constant 0 : i32
    return %arg0, %c0_i32, %c0_i32_0 : i32, i32, i32
  }
}

</mosaic_0001>

<bundles_post_ra>
// kernel: tpu_custom_call.1
= control target key start
LH: loop header
LB: loop body
LE: loop exit
PB: predicated region body
PF: predicated region fallthrough
CT: control target
= control target key end

     0   :  { %11 = vsyncpa [#allocation6], 0  ;;  %s1352_s0 = inlined_call_operand.vmem [shape: f32[2], index: 0, kind: input, shape index: {}]   ;;  %s1353_s1 = inlined_call_operand.vmem [shape: f32[16,16], index: 1, kind: input, shape index: {}]   ;;  %s1354_s2 = inlined_call_operand.vmem [shape: f32[16,8], index: 2, kind: input, shape index: {}]   ;;  %s1355_s3 = inlined_call_operand.vmem [shape: f32[2,16,8], index: 3, kind: input, shape index: {}]   ;;  %s1356_s4 = inlined_call_operand.hbm [shape: f32[2,128,128], index: 4, kind: input, shape index: {}]   ;;  %s1357_s5 = inlined_call_operand.vmem [shape: f32[2,1,128], index: 5, kind: input, shape index: {}]   ;;  %s1358_s6 = inlined_call_operand.hbm [shape: f32[2,16,128], index: 6, kind: output, shape index: {}]  }
   0x1   :  { %12 = vsyncpa [#allocation4], 0 }
   0x2   :  { %13 = vsyncpa [#allocation5], 0 }
   0x3   :  { %15 = vsyncpa [#allocation5 + $0x1], 0  ;;  %s1174_s21 = smov 0   ;;  %s1176_s22 = smov 0  }
   0x4   :  { %s1178_s23 = smov 0   ;;  %s1180_s24 = smov 0  }
   0x5 LB: > { %s1195_s25 = sadd.s32 4294967295, %s1129_s24   ;;  %s799_s26 = sadd.s32 4294967294, %s1129_s24   ;;  %s1129_s24 = sphi %s1180_s24, %s1376_s24   ;;  %s1125_s23 = sphi %s1178_s23, %s1375_s23   ;;  %s1121_s22 = sphi %s1176_s22, %s1374_s22   ;;  %s1117_s21 = sphi %s1174_s21, %s1373_s21  }
   0x6   : > { %s1199_s27 = sadd.s32 1, %s1129_s24   ;;  %s159_s28 = sadd.s32 1, %s1125_s23 }
   0x7   : > { %s156_s29 = ssub.s32 %s1129_s24, %s1199_s27  ;;  %p169_p0 = scmp.ne.s32.totalorder %s1125_s23, %s1121_s22 }
   0x8   : > { %p157_p1 = scmp.eq.s32.totalorder %s156_s29, 0  ;;  %p170_p2 = scmp.eq.s32.totalorder %s1195_s25, 1 }
   0x9   : > { %p175_p3 = scmp.ne.s32.totalorder %s1121_s22, %s1117_s21  ;;  %p176_p4 = scmp.eq.s32.totalorder %s799_s26, 1 }
   0xa   : > { %s1210_s30 = scalar_select %p157_p1, %s1125_s23, %s159_s28  }
   0xb   : > { %p1212_p5 = por %p170_p2, %p169_p0  ;;  %p1216_p6 = por %p176_p4, %p175_p3 }
   0xc   : > { %p800_p7 = scmp.ge.s32.totalorder %s1129_s24, 1  ;;  %p183_p8 = scmp.lt.s32.totalorder %s1129_s24, 3 }
   0xd   : > { %s1362_s7 = scalar_select %p1212_p5, 1, 0 }
   0xe   : > { %s1363_s8 = scalar_select %p1216_p6, 1, 0 }
   0xf   : > { %p1359_p9 = scmp.eq.s32.totalorder %s1195_s25, 0  ;;  %p1223_p10 = pnand %p800_p7, %p183_p8 }
  0x10   : > { %s196_s12 = sshll.u32 %s1352_s0, 4  ;;  %s1131_s13 = smov [#allocation7]   ;;  %s197_s12 = int_to_ptr.vmem [resolvable:$true] %s196_s12 }
  0x11   : > { %s1364_s9 = scalar_select %p1223_p10, 1, 0 }
  0x12   : > { %p965_p11 = pneg %p1223_p10  ;;  %s212_s14 = sshll.u32 %s1131_s13, 4  ;;  %s213_s14 = int_to_ptr.vmem [resolvable:$true] %s212_s14 }
  0x13   : > { %s1020_s16 = scalar_lea.vmem %s197_s12, 16  ;;  %p1028_p3 = scmp.lt.s32.totalorder %s197_s12, %s197_s12 }
  0x14   : > { %p1234_p12 = pnand %p1359_p9, %p965_p11  ;;  %p1021_p13 = scmp.ne.s32.totalorder %s197_s12, %s1020_s16 }
  0x15   : > { %p1029_p4 = scmp.lt.s32.totalorder %s1020_s16, %s1020_s16 }
  0x16   : > { %p1022_p0 = pneg %p1234_p12 }
  0x17   : > { %p1030_p7 = por %p1029_p4, %p1028_p3 }
  0x18   : > { %p1023_p1 = pnand %p1022_p0, %p1021_p13 }
  0x1a   : > { %p1024_p2 = pneg %p1023_p1 }
  0x1c   : > { %p1031_p8 = pnand %p1030_p7, %p1024_p2 }
  0x1e   : > { %1034 = shalt.err (!%p1031_p8)
}
  0x1f   : > { %s1132_s17 = smov [#allocation3]   ;;  %s1046_s18 = scalar_lea.vmem %s213_s14, 4096 }
  0x20   : > { %968 = dma.vmem_to_smem (!%p1234_p12), %s197_s12, 16, %s1132_s17, [#allocation6]  }
  0x21   : > { %p1047_p11 = scmp.ne.s32.totalorder %s213_s14, %s1046_s18  ;;  %p1054_p5 = scmp.lt.s32.totalorder %s213_s14, %s213_s14 }
  0x22   : > { %p1055_p10 = scmp.lt.s32.totalorder %s1046_s18, %s1046_s18 }
  0x23   : > { %p1049_p9 = pnand %p1047_p11, %p1022_p0 }
  0x24   : > { %p1056_p13 = por %p1055_p10, %p1054_p5 }
  0x25   : > { %p1050_p6 = pneg %p1049_p9 }
  0x27   : > { %p1057_p1 = pnand %p1056_p13, %p1050_p6 }
  0x29   : > { %1060 = shalt.err (!%p1057_p1)
}
  0x2a   : > { %s1133_s19 = smov 128   ;;  %s1134_s20 = smov 8  }
  0x2b   : > { %971 = dma.hbm_to_vmem [thread:$0]  (!%p1234_p12), %s1356_s4, 4096, %s213_s14, [#allocation4], %s1133_s19, %s1133_s19, %s1134_s20  }
  0x2c   : > { %p1366_p2 = scmp.ne.s32.totalorder %s1364_s9, 0 }
  0x2d   : > { %p1367_p3 = scmp.eq.s32.totalorder (!%p1366_p2), %s1195_s25, 0 }
  0x2e   : > { %239 = sbr.rel (%p1366_p2) target bundleno = 996 (0x3e4), region = 44 }
  0x33   : > { %1104 = dma.done.wait (%p1367_p3), [#allocation6], 16   ;;  %p1368_p9 = pmov %p1367_p3 }
  0x34   : > { %p1369_p5 = pmov %p1367_p3 }
  0x35   : > { %1106 = vsyncadd (%p1368_p9), [#allocation6], 4294967280 }
  0x36   : > { %1108 = dma.done.wait (%p1369_p5), [#allocation4], 4096   ;;  %p1370_p6 = pmov %p1367_p3 }
  0x38   : > { %1110 = vsyncadd (%p1370_p6), [#allocation4], 4294963200 }
  0x39   : > { %249 = sfence }
  0x3a   : > { %p274_p10 = scmp.lt.s32.totalorder %s1195_s25, 1  ;;  %v282_v0 = vld [vmem:[%s1354_s2 + $0x8] sm:$0xff]  ;;  %vm283_vm0 = vcmask 64512   ;;  %v299_v1 = vlaneseq  ;;  %v1135_v2 = vmov 0.0   ;;  %v281_v3 = vld [vmem:[%s1354_s2] sm:$0xff]  ;;  %s312_s12 = sld [smem:[#allocation3]] }
  0x3b   : > { %280 = vst [vmem:[#allocation2 + $0x8] sm:$0xff] %v1135_v2  ;;  %279 = vst [vmem:[#allocation2] sm:$0xff] %v1135_v2  ;;  %s1136_s18 = smov 8   ;;  %v1276_v11 = vld [vmem:[%s1353_s1] sm:$0xff]  ;;  %vm321_vm3 = vcmask 130048   ;;  %vm296_vm4 = vcmask 130112  }
  0x3c   : > { %s275_s13 = scalar_select %p274_p10, %s1195_s25, 1  ;;  %285 = vst.msk [vmem:[#allocation2 + $0x8] sm:$0xff] %vm283_vm0, %v282_v0  ;;  %284 = vst.msk [vmem:[#allocation2] sm:$0xff] %vm283_vm0, %v281_v3  ;;  %v300_v4 = vshrl.u32 %v299_v1, 7  ;;  %v303_v5 = vand.u32 127, %v299_v1  ;;  %v1286_v19 = vld [vmem:[%s1353_s1 + $0x8] sm:$0xff] }
  0x3d   : > { %v418_v22 = vld [vmem:[#allocation7 + $0x78] sm:$0xff]  ;;  %v417_v23 = vld [vmem:[#allocation7 + $0x70] sm:$0xff]  ;;  %v416_v24 = vld [vmem:[#allocation7 + $0x68] sm:$0xff]  ;;  %s815_s10 = sld [smem:[#allocation3 + $0x1]]  ;;  %p1371_p0 = scmp.ne.s32.totalorder %s1362_s7, 0 }
  0x3e   : > { %s825_s14 = sshll.u32 %s275_s13, 4  ;;  %v301_v6 = vadd.s32 8, %v300_v4  ;;  %vm304_vm1 = vcmp.eq.s32.totalorder %v300_v4, %v303_v5  ;;  %v415_v25 = vld [vmem:[#allocation7 + $0x60] sm:$0xff]  ;;  %v414_v26 = vld [vmem:[#allocation7 + $0x58] sm:$0xff]  ;;  %v413_v27 = vld [vmem:[#allocation7 + $0x50] sm:$0xff]  ;;  %s271_s13 = sand.u32 1, %s1121_s22  }
  0x3f   : > { %s278_s17 = scalar_lea.vmem %s1355_s3, %s825_s14  ;;  %v1269_v8 = vsel %vm304_vm1, 1.0, %v1135_v2  ;;  %v412_v28 = vld [vmem:[#allocation7 + $0x48] sm:$0xff]  ;;  %v411_v29 = vld [vmem:[#allocation7 + $0x40] sm:$0xff]  ;;  %v410_v30 = vld [vmem:[#allocation7 + $0x38] sm:$0xff]  ;;  %s807_s14 = sshll.u32 %s271_s13, 4 }
  0x40   : > { %v287_v7 = vld [vmem:[%s278_s17 + $0x8] sm:$0xff]  ;;  %vm305_vm2 = vcmp.eq.s32.totalorder %v301_v6, %v303_v5  ;;  %s313_s19 = sadd.f32 1.0, %s312_s12  ;;  %v286_v10 = vld [vmem:[%s278_s17] sm:$0xff]  ;;  %v408_v32 = vld [vmem:[#allocation7 + $0x28] sm:$0xff]  ;;  %s826_s17 = sshll.u32 %s1195_s25, 8 }
  0x41   : > { %292 = vrot.lane.b32.xlu0 %v287_v7, %s1136_s18  ;;  %v1271_v9 = vsel %vm305_vm2, 1.0, %v1135_v2  ;;  %v409_v31 = vld [vmem:[#allocation7 + $0x30] sm:$0xff]  ;;  %v407_v33 = vld [vmem:[#allocation7 + $0x20] sm:$0xff]  ;;  %v406_v34 = vld [vmem:[#allocation7 + $0x18] sm:$0xff]  ;;  %s1307_s29 = scalar_lea.hbm %s1358_s6, %s826_s17  ;;  %s1311_s25 = scalar_lea.sflag [#allocation5], %s271_s13 }
  0x42   : > { %v314_v12 = vstv %s313_s19  ;;  %v405_v35 = vld [vmem:[#allocation7 + $0x10] sm:$0xff]  ;;  %v404_v36 = vld [vmem:[#allocation7 + $0x8] sm:$0xff]  ;;  %v403_v37 = vld [vmem:[#allocation7] sm:$0xff]  ;;  %s273_s19 = scalar_lea.vmem [#allocation8], %s807_s14 }
  0x43   : > { %v315_v13 = vmul.f32 %v1269_v8, %v314_v12  ;;  %v316_v17 = vmul.f32 %v1271_v9, %v314_v12  ;;  %s504_s9 = sadd.f32 1.0, %s815_s10  ;;  %v814_v43 = vld [vmem:[%s1357_s5] ss:$0 sm:$0xff]  ;;  %v609_v50 = vld [vmem:[#allocation7 + $0xf8] sm:$0xff]  ;;  %v607_v52 = vld [vmem:[#allocation7 + $0xe8] sm:$0xff]  ;;  %s713_s20 = sshll.u32 %s273_s19, 4  ;;  %s1309_s20 = int_to_ptr.vmem [resolvable:$true] %s713_s20 }
  0x44   : > { %v608_v51 = vld [vmem:[#allocation7 + $0xf0] sm:$0xff]  ;;  %v606_v53 = vld [vmem:[#allocation7 + $0xe0] sm:$0xff]  ;;  %v605_v54 = vld [vmem:[#allocation7 + $0xd8] sm:$0xff]  ;;  %s1061_s10 = scalar_lea.vmem %s1309_s20, 256 }
  0x45   : > { %290 = vrot.lane.b32.xlu0 %v286_v10, %s1136_s18  ;;  %v317_v14 = vadd.f32 %v315_v13, %v1276_v11  ;;  %v318_v20 = vadd.f32 %v316_v17, %v1286_v19  ;;  %v505_v40 = vstv %s504_s9  ;;  %v604_v55 = vld [vmem:[#allocation7 + $0xd0] sm:$0xff]  ;;  %v603_v56 = vld [vmem:[#allocation7 + $0xc8] sm:$0xff]  ;;  %v602_v57 = vld [vmem:[#allocation7 + $0xc0] sm:$0xff]  ;;  %p1062_p12 = scmp.ne.s32.totalorder %s1309_s20, %s1061_s10  ;;  %s1137_s9 = smov [#allocation8]  }
  0x46   : > { %v506_v41 = vmul.f32 %v1269_v8, %v505_v40  ;;  %v507_v44 = vmul.f32 %v1271_v9, %v505_v40  ;;  %v601_v58 = vld [vmem:[#allocation7 + $0xb8] sm:$0xff]  ;;  %v600_v59 = vld [vmem:[#allocation7 + $0xb0] sm:$0xff]  ;;  %v599_v60 = vld [vmem:[#allocation7 + $0xa8] sm:$0xff]  ;;  %s1065_s11 = sshll.u32 %s1137_s9, 4  ;;  %s1066_s11 = int_to_ptr.vmem [resolvable:$false] %s1065_s11 }
  0x47   : > { %875 = vmatprep.mubr.msk.f32.mxu1 %vm321_vm3, %v317_v14  ;;  %v598_v61 = vld [vmem:[#allocation7 + $0xa0] sm:$0xff]  ;;  %v597_v62 = vld [vmem:[#allocation7 + $0x98] sm:$0xff]  ;;  %v596_v63 = vld [vmem:[#allocation7 + $0x90] sm:$0xff]  ;;  %p1063_p4 = pnand %p1062_p12, %p1371_p0  ;;  %s1067_s12 = scalar_lea.vmem %s1066_s11, 512 }
  0x48   : > { %v508_v42 = vadd.f32 %v506_v41, %v1276_v11  ;;  %v509_v49 = vadd.f32 %v507_v44, %v1286_v19  ;;  %v595_v0 = vld [vmem:[#allocation7 + $0x88] sm:$0xff]  ;;  %v594_v1 = vld [vmem:[#allocation7 + $0x80] sm:$0xff]  ;;  %v819_v4 = vld [vmem:[%s1357_s5 + $0x1] ss:$0 sm:$0xff]  ;;  %p1068_p8 = scmp.lt.s32.totalorder %s1309_s20, %s1066_s11  ;;  %p1069_p11 = scmp.lt.s32.totalorder %s1067_s12, %s1061_s10 }
  0x49   : > { %p1064_p7 = pneg %p1063_p4 }
  0x4a   : > { %917 = vmatprep.mubr.msk.f32.mxu0 %vm321_vm3, %v508_v42  ;;  %p1070_p13 = por %p1069_p11, %p1068_p8 }
  0x4c   : > { %p1071_p1 = pnand %p1070_p13, %p1064_p7 }
  0xb3   : > { %v293_v15 = vpop.permute.xlu0 %292 }
  0xb4   : > { %298 = vst.msk [vmem:[#allocation2 + $0x8] sm:$0xff] %vm296_vm4, %v293_v15 }
  0xb7   : > { %v291_v16 = vpop.permute.xlu0 %290 }
  0xb8   : > { %297 = vst.msk [vmem:[#allocation2] sm:$0xff] %vm296_vm4, %v291_v16 }
  0xbb   : > { %v320_v18 = vld [vmem:[#allocation2 + $0x8] sm:$0xff] }
  0xbc   : > { %871 = vmatprep.subr.mxu1 %v320_v18 }
  0xbd   : > { %872 = vmatpush3.msra.mxu1 %v320_v18 }
  0xbf   : > { %v319_v21 = vld [vmem:[#allocation2] sm:$0xff] }
  0xc0   : > { %873 = vmatprep.subr.mxu1 %v319_v21 }
  0xc1   : > { %874 = vmatpush3.msra.mxu1 %v319_v21 }
  0xc2   : > { %876 = vmatmul.mubr.msk.f32.vlgmr.msra.gmra.mxu1 %vm321_vm3, %v318_v20  ;;  %878 = vmatprep.subr.mxu1 %v418_v22 }
  0xc3   : > { %879 = vmatpush3.msra.mxu1 %v418_v22 }
  0xc4   : > { %880 = vmatprep.subr.mxu1 %v417_v23 }
  0xc5   : > { %881 = vmatpush3.msra.mxu1 %v417_v23 }
  0xc6   : > { %882 = vmatprep.subr.mxu1 %v416_v24 }
  0xc7   : > { %883 = vmatpush3.msra.mxu1 %v416_v24 }
  0xc8   : > { %884 = vmatprep.subr.mxu1 %v415_v25 }
  0xc9   : > { %885 = vmatpush3.msra.mxu1 %v415_v25 }
  0xca   : > { %886 = vmatprep.subr.mxu1 %v414_v26 }
  0xcb   : > { %887 = vmatpush3.msra.mxu1 %v414_v26 }
  0xcc   : > { %888 = vmatprep.subr.mxu1 %v413_v27 }
  0xcd   : > { %889 = vmatpush3.msra.mxu1 %v413_v27 }
  0xce   : > { %890 = vmatprep.subr.mxu1 %v412_v28 }
  0xcf   : > { %891 = vmatpush3.msra.mxu1 %v412_v28 }
  0xd0   : > { %892 = vmatprep.subr.mxu1 %v411_v29 }
  0xd1   : > { %893 = vmatpush3.msra.mxu1 %v411_v29 }
  0xd2   : > { %894 = vmatprep.subr.mxu1 %v410_v30 }
  0xd3   : > { %895 = vmatpush3.msra.mxu1 %v410_v30 }
  0xd4   : > { %896 = vmatprep.subr.mxu1 %v409_v31 }
  0xd5   : > { %897 = vmatpush3.msra.mxu1 %v409_v31 }
  0xd6   : > { %898 = vmatprep.subr.mxu1 %v408_v32 }
  0xd7   : > { %899 = vmatpush3.msra.mxu1 %v408_v32 }
  0xd8   : > { %900 = vmatprep.subr.mxu1 %v407_v33 }
  0xd9   : > { %901 = vmatpush3.msra.mxu1 %v407_v33 }
  0xda   : > { %902 = vmatprep.subr.mxu1 %v406_v34 }
  0xdb   : > { %903 = vmatpush3.msra.mxu1 %v406_v34 }
  0xdc   : > { %904 = vmatprep.subr.mxu1 %v405_v35 }
  0xdd   : > { %905 = vmatpush3.msra.mxu1 %v405_v35 }
  0xde   : > { %906 = vmatprep.subr.mxu1 %v404_v36 }
  0xdf   : > { %907 = vmatpush3.msra.mxu1 %v404_v36 }
  0xe0   : > { %908 = vmatprep.subr.mxu1 %v403_v37 }
  0xe1   : > { %909 = vmatpush3.msra.mxu1 %v403_v37 }
 0x182   : > { %v877_v38 = vpop.f32.mrf.mxu1 }
 0x184   : > { %v394_v39 = vpop.f32.mrf.mxu1 }
 0x185   : > { %910 = vmatprep.mubr.f32.mxu1 %v394_v39 }
 0x186   : > { %911 = vmatmul.mubr.f32.vlgmr.msra.gmra.mxu1 %v877_v38 }
 0x246   : > { %v912_v45 = vpop.f32.mrf.mxu1 }
 0x247   : > { %v498_v46 = vadd.f32 %v912_v45, %v814_v43 }
 0x248   : > { %v492_v47 = vpop.f32.mrf.mxu1 }
 0x249   : > { %v493_v48 = vadd.f32 %v814_v43, %v492_v47  ;;  %913 = vmatprep.subr.mxu0 %v498_v46 }
 0x24a   : > { %914 = vmatpush3.msra.mxu0 %v498_v46 }
 0x24b   : > { %915 = vmatprep.subr.mxu0 %v493_v48 }
 0x24c   : > { %916 = vmatpush3.msra.mxu0 %v493_v48 }
 0x24d   : > { %918 = vmatmul.mubr.msk.f32.vlgmr.msra.gmra.mxu0 %vm321_vm3, %v509_v49  ;;  %920 = vmatprep.subr.mxu0 %v609_v50 }
 0x24e   : > { %921 = vmatpush3.msra.mxu0 %v609_v50 }
 0x24f   : > { %922 = vmatprep.subr.mxu0 %v608_v51 }
 0x250   : > { %923 = vmatpush3.msra.mxu0 %v608_v51 }
 0x251   : > { %924 = vmatprep.subr.mxu0 %v607_v52 }
 0x252   : > { %925 = vmatpush3.msra.mxu0 %v607_v52 }
 0x253   : > { %926 = vmatprep.subr.mxu0 %v606_v53 }
 0x254   : > { %927 = vmatpush3.msra.mxu0 %v606_v53 }
 0x255   : > { %928 = vmatprep.subr.mxu0 %v605_v54 }
 0x256   : > { %929 = vmatpush3.msra.mxu0 %v605_v54 }
 0x257   : > { %930 = vmatprep.subr.mxu0 %v604_v55 }
 0x258   : > { %931 = vmatpush3.msra.mxu0 %v604_v55 }
 0x259   : > { %932 = vmatprep.subr.mxu0 %v603_v56 }
 0x25a   : > { %933 = vmatpush3.msra.mxu0 %v603_v56 }
 0x25b   : > { %934 = vmatprep.subr.mxu0 %v602_v57 }
 0x25c   : > { %935 = vmatpush3.msra.mxu0 %v602_v57 }
 0x25d   : > { %936 = vmatprep.subr.mxu0 %v601_v58 }
 0x25e   : > { %937 = vmatpush3.msra.mxu0 %v601_v58 }
 0x25f   : > { %938 = vmatprep.subr.mxu0 %v600_v59 }
 0x260   : > { %939 = vmatpush3.msra.mxu0 %v600_v59 }
 0x261   : > { %940 = vmatprep.subr.mxu0 %v599_v60 }
 0x262   : > { %941 = vmatpush3.msra.mxu0 %v599_v60 }
 0x263   : > { %942 = vmatprep.subr.mxu0 %v598_v61 }
 0x264   : > { %943 = vmatpush3.msra.mxu0 %v598_v61 }
 0x265   : > { %944 = vmatprep.subr.mxu0 %v597_v62 }
 0x266   : > { %945 = vmatpush3.msra.mxu0 %v597_v62 }
 0x267   : > { %946 = vmatprep.subr.mxu0 %v596_v63 }
 0x268   : > { %947 = vmatpush3.msra.mxu0 %v596_v63 }
 0x269   : > { %948 = vmatprep.subr.mxu0 %v595_v0 }
 0x26a   : > { %949 = vmatpush3.msra.mxu0 %v595_v0 }
 0x26b   : > { %950 = vmatprep.subr.mxu0 %v594_v1 }
 0x26c   : > { %951 = vmatpush3.msra.mxu0 %v594_v1 }
 0x30d   : > { %v919_v2 = vpop.f32.mrf.mxu0 }
 0x30f   : > { %v584_v3 = vpop.f32.mrf.mxu0 }
 0x310   : > { %952 = vmatprep.mubr.f32.mxu0 %v584_v3 }
 0x311   : > { %953 = vmatmul.mubr.f32.vlgmr.msra.gmra.mxu0 %v919_v2 }
 0x3d1   : > { %v954_v5 = vpop.f32.mrf.mxu0 }
 0x3d2   : > { %v690_v6 = vadd.f32 %v954_v5, %v819_v4 }
 0x3d3   : > { %v684_v7 = vpop.f32.mrf.mxu0 }
 0x3d4   : > { %694 = vst [vmem:[#allocation2 + $0x8] sm:$0xff] %v690_v6  ;;  %v685_v8 = vadd.f32 %v819_v4, %v684_v7  ;;  %698 = vst [vmem:[%s273_s19 + $0x8] sm:$0xff] %v690_v6 }
 0x3d6   : > { %693 = vst [vmem:[#allocation2] sm:$0xff] %v685_v8  ;;  %697 = vst [vmem:[%s273_s19] sm:$0xff] %v685_v8 }
 0x3d7   : > { %1074 = shalt.err (!%p1071_p1)
}
 0x3d8   : > { %s1075_s13 = scalar_lea.hbm %s1307_s29, 256  ;;  %s1079_s16 = scalar_lea.hbm %s1358_s6, 512 }
 0x3d9   : > { %p1076_p2 = scmp.ne.s32.totalorder %s1307_s29, %s1075_s13  ;;  %p1080_p5 = scmp.lt.s32.totalorder %s1307_s29, %s1358_s6 }
 0x3da   : > { %p1081_p6 = scmp.lt.s32.totalorder %s1079_s16, %s1075_s13 }
 0x3db   : > { %p1077_p3 = pnand %p1076_p2, %p1371_p0 }
 0x3dc   : > { %p1082_p10 = por %p1081_p6, %p1080_p5 }
 0x3dd   : > { %p1078_p9 = pneg %p1077_p3 }
 0x3df   : > { %p1083_p12 = pnand %p1082_p10, %p1078_p9 }
 0x3e1   : > { %1086 = shalt.err (!%p1083_p12)
}
 0x3e2   : > { %s1138_s26 = smov 128  }
 0x3e3   : > { %963 = dma.vmem_to_hbm [thread:$0]  (%p1371_p0), %s1309_s20, 256, %s1307_s29, %s1311_s25, %s1138_s26, %s1138_s26, %s1136_s18  }
 0x3e4 PF: > { %p980_p4 = scmp.ge.s32.totalorder %s1129_s24, 2  ;;  %s728_s28 = sand.u32 1, %s1117_s21  }
 0x3e5   : > { %p1372_p7 = scmp.ne.s32.totalorder %s1363_s8, 0  ;;  %s729_s10 = scalar_lea.sflag [#allocation5], %s728_s28 }
 0x3e7   : > { %p973_p8 = pnand %p980_p4, %p1372_p7 }
 0x3e9   : > { %p974_p11 = pneg %p973_p8 }
 0x3eb   : > { %1112 = dma.done.wait (%p974_p11), %s729_s10, 256  }
 0x3ec   : > { %1114 = vsyncadd (%p974_p11), %s729_s10, 4294967040  ;;  %p18_p13 = scmp.ge.s32.totalorder %s1199_s27, 4   ;;  %s1373_s21 = smov %s1121_s22 }
 0x3ed   : > { %s1374_s22 = smov %s1125_s23  ;;  %s1375_s23 = smov %s1210_s30 }
 0x3ee   : > { %s1376_s24 = smov %s1199_s27  ;;  %20 = sbr.rel (!%p18_p13) target bundleno = 5 (0x5), region = 91 }
 0x3f3   :  { %734 = vsyncpa [#allocation4], 1 }
 0x3f4   :  { %736 = vsyncpa [#allocation4 + $0x1], 1 }
 0x3f5   :  { %737 = vsyncpa [#allocation5], 1 }
 0x3f6   :  { %739 = vsyncpa [#allocation5 + $0x1], 1 }
 0x3f7   :  { %740 = vsyncpa [#allocation6], 1 }
 0x3f8   :  { %742 = vsyncpa [#allocation6 + $0x1], 1 }

</bundles_post_ra>
